<compile_context>
chip_gen: v6e
topology: v6e:2x2x1
jax: 0.10.0
libtpu: 0.0.40
codegen_flags: <defaults>
</compile_context>

<pallas_src>
import functools

import jax
import jax.numpy as jnp
from jax.experimental import pallas as pl
from jax.experimental.pallas import tpu as pltpu

LANE = 128
SUBLANE = 8
NUM_HIDDEN = 4              # hidden_layer_1..4 (5..7 unused in forward())
MIN_BATCH_FOR_SPLIT = 512   # force >= 2 grid tiles above this (v7x megacore)


def _round_up(x, m):
    return ((x + m - 1) // m) * m


def _mlp_kernel(x_ref, w_in_ref, w_hid_ref, w_out_ref, b_hid_ref, b_out_ref,
                o_ref):
    """Fused MLP: (Linear+ReLU) input, 4x (Linear+ReLU) hidden, Linear output.

    x_ref:     [TB, Din_pad]      bf16 (zero-padded, lane-dense)
    w_in_ref:  [Din_pad, H_pad]   bf16 (resident across grid)
    w_hid_ref: [4, H_pad, H_pad]  bf16 (resident)
    w_out_ref: [H_pad, Dout_pad]  bf16 (resident)
    b_hid_ref: [5, H_pad]         f32  (input + hidden_1..4 biases)
    b_out_ref: [1, Dout_pad]      f32
    o_ref:     [TB, Dout_pad]     f32  (lane-dense -> unmasked stores)
    """
    b_hid = b_hid_ref[...]  # hoisted: single load, indexed per layer below

    # input layer + ReLU
    y = jnp.dot(x_ref[...], w_in_ref[...], preferred_element_type=jnp.float32)
    h = jnp.maximum(y + b_hid[0:1, :], 0.0).astype(jnp.bfloat16)

    # hidden layers 1..4 + ReLU
    for k in range(NUM_HIDDEN):
        y = jnp.dot(h, w_hid_ref[k], preferred_element_type=jnp.float32)
        h = jnp.maximum(y + b_hid[k + 1:k + 2, :], 0.0).astype(jnp.bfloat16)

    # output layer (no activation), f32 result stored directly
    out = jnp.dot(h, w_out_ref[...], preferred_element_type=jnp.float32)
    o_ref[...] = out + b_out_ref[...]


def pack_params(params):
    """Pack 6 (w, b) pairs into per-layer-padded slabs.

    Weights come in as [in_features, out_features] f32. Each dimension is
    zero-padded independently to a multiple of 128 lanes:
      w_in  -> [Din_pad, H_pad]   bf16
      w_hid -> [4, H_pad, H_pad]  bf16
      w_out -> [H_pad, Dout_pad]  bf16
      b_hid -> [5, H_pad]         f32  (input + hidden biases)
      b_out -> [1, Dout_pad]      f32
    Zero-padded rows/cols/bias entries leave the math unchanged.
    """
    assert len(params) == 2 + NUM_HIDDEN
    w_in, _ = params[0]
    w_out, b_out = params[-1]
    in_dim, hidden = w_in.shape
    out_dim = w_out.shape[1]
    din_pad = _round_up(in_dim, LANE)
    h_pad = _round_up(hidden, LANE)
    dout_pad = _round_up(out_dim, LANE)

    def pad_w(w, rows, cols):
        return jnp.pad(w.astype(jnp.bfloat16),
                       ((0, rows - w.shape[0]), (0, cols - w.shape[1])))

    def pad_b(b, cols):
        b = b.reshape(-1).astype(jnp.float32)
        return jnp.pad(b, (0, cols - b.shape[0]))

    w_in_p = pad_w(w_in, din_pad, h_pad)
    w_hid_p = jnp.stack([pad_w(w, h_pad, h_pad) for (w, _) in params[1:-1]])
    w_out_p = pad_w(w_out, h_pad, dout_pad)
    b_hid_p = jnp.stack([pad_b(b, h_pad) for (_, b) in params[:-1]])
    b_out_p = pad_b(b_out, dout_pad).reshape(1, dout_pad)
    return w_in_p, w_hid_p, w_out_p, b_hid_p, b_out_p


@functools.partial(jax.jit, static_argnames=("use_forces", "batch_tile"))
def noise_predictor_initial_forward(noisy_trajectory, packed, forces=None,
                                    use_forces=False, batch_tile=512):
    """JAX wrapper reproducing NoisePredictorInitial.forward.

    noisy_trajectory: [batch, seq_length, 3] f32
    forces:           [batch, seq_length, 3] f32 (required iff use_forces)
    returns:          [batch, seq_length, 3] f32
    """
    w_in_p, w_hid_p, w_out_p, b_hid_p, b_out_p = packed
    batch, seq_length, _ = noisy_trajectory.shape
    if use_forces:
        if forces is None:
            raise ValueError("use_forces=True requires a `forces` tensor.")
        x = jnp.concatenate((noisy_trajectory, forces), axis=-1)  # [B, S, 6]
    else:
        x = noisy_trajectory                                       # [B, S, 3]
    x = x.reshape(batch, -1)                                       # torch .view(B, -1)
    in_dim = x.shape[1]
    out_dim = seq_length * 3

    din_pad, h_pad = w_in_p.shape
    dout_pad = w_out_p.shape[1]
    assert in_dim <= din_pad and out_dim <= dout_pad, "packed params mismatch"

    # --- adaptive batch tiling (sublane-aligned, minimal padding) ---------
    b8 = _round_up(batch, SUBLANE)
    tb = min(batch_tile, b8)
    num_tiles = -(-b8 // tb)                      # cdiv
    if num_tiles == 1 and b8 >= MIN_BATCH_FOR_SPLIT:
        num_tiles = 2                             # v7x: feed both TensorCores
    tb = _round_up(-(-b8 // num_tiles), SUBLANE)  # even split, <8 pad rows/tile
    b_pad = tb * num_tiles

    # Minimal lane-dense bf16 input pad (single pad, no oversized scatter).
    x_p = jnp.pad(x.astype(jnp.bfloat16),
                  ((0, b_pad - batch), (0, din_pad - in_dim)))

    weight_bytes = 2 * (w_in_p.size + w_hid_p.size + w_out_p.size)
    bias_bytes = 4 * (b_hid_p.size + b_out_p.size)
    io_bytes = 2 * (tb * din_pad * 2 + tb * dout_pad * 4)  # double-buffered x/out
    flops = 2 * b_pad * (din_pad * h_pad + NUM_HIDDEN * h_pad * h_pad
                         + h_pad * dout_pad)

    # Weights are grid-resident (constant index_map); budget them (x2 in case
    # the pipeline double-buffers) plus the double-buffered I/O tiles.
    # TODO(synk): stream weights per layer (layer-indexed grid axis or
    # emit_pipeline) when 2*weight_bytes approaches v7x's 64 MiB VMEM.
    vmem_need = 2 * weight_bytes + bias_bytes + io_bytes + (4 << 20)
    vmem_limit = int(min(max(vmem_need, 32 << 20), 64 << 20))

    cost = pl.CostEstimate(
        flops=int(flops),
        transcendentals=0,
        bytes_accessed=int(x_p.size * 2 + weight_bytes + bias_bytes
                           + b_pad * dout_pad * 4),
    )

    out = pl.pallas_call(
        _mlp_kernel,
        out_shape=jax.ShapeDtypeStruct((b_pad, dout_pad), jnp.float32),
        grid=(num_tiles,),
        in_specs=[
            pl.BlockSpec((tb, din_pad), lambda i: (i, 0)),                 # x tile
            pl.BlockSpec((din_pad, h_pad), lambda i: (0, 0)),              # w_in
            pl.BlockSpec((NUM_HIDDEN, h_pad, h_pad), lambda i: (0, 0, 0)),  # w_hid
            pl.BlockSpec((h_pad, dout_pad), lambda i: (0, 0)),             # w_out
            pl.BlockSpec((NUM_HIDDEN + 1, h_pad), lambda i: (0, 0)),       # b_hid
            pl.BlockSpec((1, dout_pad), lambda i: (0, 0)),                 # b_out
        ],
        out_specs=pl.BlockSpec((tb, dout_pad), lambda i: (i, 0)),
        compiler_params=pltpu.CompilerParams(
            dimension_semantics=("parallel",),
            vmem_limit_bytes=vmem_limit),
        cost_estimate=cost,
    )(x_p, w_in_p, w_hid_p, w_out_p, b_hid_p, b_out_p)

    return out[:batch, :out_dim].reshape(batch, seq_length, 3)


def init_params(key, seq_length, hidden_dim, use_forces=False):
    """PyTorch-Linear-style init (uniform +- 1/sqrt(fan_in)).

    Weights stored as [in_features, out_features] f32; biases as [out] f32.
    """
    input_dim = seq_length * 3 * (2 if use_forces else 1)
    out_dim = seq_length * 3
    dims = [
        (input_dim, hidden_dim),   # input_layer
        (hidden_dim, hidden_dim),  # hidden_layer_1
        (hidden_dim, hidden_dim),  # hidden_layer_2
        (hidden_dim, hidden_dim),  # hidden_layer_3
        (hidden_dim, hidden_dim),  # hidden_layer_4
        (hidden_dim, out_dim),     # output_layer
    ]
    params = []
    for (fan_in, fan_out) in dims:
        key, kw, kb = jax.random.split(key, 3)
        bound = 1.0 / (fan_in ** 0.5)
        w = jax.random.uniform(kw, (fan_in, fan_out), jnp.float32, -bound, bound)
        b = jax.random.uniform(kb, (fan_out,), jnp.float32, -bound, bound)
        params.append((w, b))
    return params


def _reference(noisy_trajectory, params, forces=None, use_forces=False,
               bf16_matmul=False):
    """Pure-JAX reference. bf16_matmul=True mirrors the kernel's precision."""
    batch, seq_length, _ = noisy_trajectory.shape
    if use_forces:
        x = jnp.concatenate((noisy_trajectory, forces), axis=-1)
    else:
        x = noisy_trajectory
    h = x.reshape(batch, -1)
    n = len(params)
    for li, (w, b) in enumerate(params):
        if bf16_matmul:
            y = jnp.dot(h.astype(jnp.bfloat16), w.astype(jnp.bfloat16),
                        preferred_element_type=jnp.float32) + b
        else:
            y = jnp.dot(h, w) + b
        h = y if li == n - 1 else jnp.maximum(y, 0.0)
    return h.reshape(batch, seq_length, 3)


if __name__ == "__main__":
    batch = 2
    seq_length = 8
    hidden_dim = 32

    key = jax.random.PRNGKey(0)
    k_traj, k_force = jax.random.split(key)
    noisy_trajectory = jax.random.normal(k_traj, (batch, seq_length, 3),
                                         jnp.float32)
    forces = jax.random.normal(k_force, (batch, seq_length, 3), jnp.float32)

    for use_forces in (False, True):
        params = init_params(jax.random.PRNGKey(42), seq_length, hidden_dim,
                             use_forces)
        packed = pack_params(params)
        out = noise_predictor_initial_forward(
            noisy_trajectory, packed,
            forces=forces if use_forces else None,
            use_forces=use_forces)
        out = jax.block_until_ready(out)
        assert out.shape == (batch, seq_length, 3)

        # Matching-precision reference (bf16 MXU inputs, f32 accumulation):
        ref_bf16 = _reference(noisy_trajectory, params, forces, use_forces,
                              bf16_matmul=True)
        assert jnp.allclose(out, ref_bf16, atol=2e-2, rtol=2e-2), \
            "mismatch vs matching-precision reference"
        # Pure-f32 reference (the actual PyTorch semantics); looser tolerance
        # absorbs the deliberate bf16 inter-layer cast on the MXU path.
        ref_f32 = _reference(noisy_trajectory, params, forces, use_forces,
                             bf16_matmul=False)
        assert jnp.allclose(out, ref_f32, atol=5e-2, rtol=5e-2), \
            "mismatch vs f32 reference"

    print("KERNEL_OK")
</pallas_src>

<mosaic_0001>
module attributes {stable_mosaic.version = 11 : i64} {
  func.func @_mlp_kernel(%arg0: i32, %arg1: memref<8x128xbf16, #tpu.memory_space<vmem>>, %arg2: memref<128x128xbf16, #tpu.memory_space<vmem>>, %arg3: memref<4x128x128xbf16, #tpu.memory_space<vmem>>, %arg4: memref<128x128xbf16, #tpu.memory_space<vmem>>, %arg5: memref<5x128xf32, #tpu.memory_space<vmem>>, %arg6: memref<1x128xf32, #tpu.memory_space<vmem>>, %arg7: memref<8x128xf32, #tpu.memory_space<vmem>>) attributes {dimension_semantics = [#tpu.dimension_semantics<parallel>], iteration_bounds = array<i64: 1>, scalar_prefetch = 0 : i64, scratch_operands = 0 : i64, tpu.core_type = #tpu.core_type<tc>, window_params = [{transform_indices = @transform_0, window_bounds = array<i64: 8, 128>}, {pipeline_mode = #tpu.pipeline_mode<synchronous>, transform_indices = @transform_1, window_bounds = array<i64: 128, 128>}, {pipeline_mode = #tpu.pipeline_mode<synchronous>, transform_indices = @transform_2, window_bounds = array<i64: 4, 128, 128>}, {pipeline_mode = #tpu.pipeline_mode<synchronous>, transform_indices = @transform_3, window_bounds = array<i64: 128, 128>}, {pipeline_mode = #tpu.pipeline_mode<synchronous>, transform_indices = @transform_4, window_bounds = array<i64: 5, 128>}, {pipeline_mode = #tpu.pipeline_mode<synchronous>, transform_indices = @transform_5, window_bounds = array<i64: 1, 128>}, {transform_indices = @transform_6, window_bounds = array<i64: 8, 128>}]} {
    %c0 = arith.constant 0 : index
    %c0_0 = arith.constant 0 : index
    %0 = vector.load %arg5[%c0, %c0_0] : memref<5x128xf32, #tpu.memory_space<vmem>>, vector<5x128xf32>
    %c0_1 = arith.constant 0 : index
    %c0_2 = arith.constant 0 : index
    %1 = vector.load %arg1[%c0_1, %c0_2] : memref<8x128xbf16, #tpu.memory_space<vmem>>, vector<8x128xbf16>
    %c0_3 = arith.constant 0 : index
    %c0_4 = arith.constant 0 : index
    %2 = vector.load %arg2[%c0_3, %c0_4] : memref<128x128xbf16, #tpu.memory_space<vmem>>, vector<128x128xbf16>
    %cst = arith.constant dense<0.000000e+00> : vector<8x128xf32>
    %3 = tpu.matmul %1, %2, %cst {dimension_numbers = #tpu.dot_dimension_numbers<[1], [0], [0], [1], [0, 0, 1, 1], [], []>} : vector<8x128xbf16>, vector<128x128xbf16>, vector<8x128xf32> -> vector<8x128xf32>
    %4 = vector.extract_strided_slice %0 {offsets = [0, 0], sizes = [1, 128], strides = [1, 1]} : vector<5x128xf32> to vector<1x128xf32>
    %5 = vector.broadcast %4 : vector<1x128xf32> to vector<8x128xf32>
    %6 = arith.addf %3, %5 : vector<8x128xf32>
    %cst_5 = arith.constant 0.000000e+00 : f32
    %7 = vector.broadcast %cst_5 : f32 to vector<8x128xf32>
    %8 = arith.maximumf %6, %7 : vector<8x128xf32>
    %9 = arith.truncf %8 : vector<8x128xf32> to vector<8x128xbf16>
    %c0_6 = arith.constant 0 : index
    %c0_7 = arith.constant 0 : index
    %c0_8 = arith.constant 0 : index
    %10 = vector.load %arg3[%c0_6, %c0_7, %c0_8] : memref<4x128x128xbf16, #tpu.memory_space<vmem>>, vector<1x128x128xbf16>
    %11 = vector.shape_cast %10 : vector<1x128x128xbf16> to vector<128x128xbf16>
    %cst_9 = arith.constant dense<0.000000e+00> : vector<8x128xf32>
    %12 = tpu.matmul %9, %11, %cst_9 {dimension_numbers = #tpu.dot_dimension_numbers<[1], [0], [0], [1], [0, 0, 1, 1], [], []>} : vector<8x128xbf16>, vector<128x128xbf16>, vector<8x128xf32> -> vector<8x128xf32>
    %13 = vector.extract_strided_slice %0 {offsets = [1, 0], sizes = [1, 128], strides = [1, 1]} : vector<5x128xf32> to vector<1x128xf32>
    %14 = vector.broadcast %13 : vector<1x128xf32> to vector<8x128xf32>
    %15 = arith.addf %12, %14 : vector<8x128xf32>
    %cst_10 = arith.constant 0.000000e+00 : f32
    %16 = vector.broadcast %cst_10 : f32 to vector<8x128xf32>
    %17 = arith.maximumf %15, %16 : vector<8x128xf32>
    %18 = arith.truncf %17 : vector<8x128xf32> to vector<8x128xbf16>
    %c1 = arith.constant 1 : index
    %c0_11 = arith.constant 0 : index
    %c0_12 = arith.constant 0 : index
    %19 = vector.load %arg3[%c1, %c0_11, %c0_12] : memref<4x128x128xbf16, #tpu.memory_space<vmem>>, vector<1x128x128xbf16>
    %20 = vector.shape_cast %19 : vector<1x128x128xbf16> to vector<128x128xbf16>
    %cst_13 = arith.constant dense<0.000000e+00> : vector<8x128xf32>
    %21 = tpu.matmul %18, %20, %cst_13 {dimension_numbers = #tpu.dot_dimension_numbers<[1], [0], [0], [1], [0, 0, 1, 1], [], []>} : vector<8x128xbf16>, vector<128x128xbf16>, vector<8x128xf32> -> vector<8x128xf32>
    %22 = vector.extract_strided_slice %0 {offsets = [2, 0], sizes = [1, 128], strides = [1, 1]} : vector<5x128xf32> to vector<1x128xf32>
    %23 = vector.broadcast %22 : vector<1x128xf32> to vector<8x128xf32>
    %24 = arith.addf %21, %23 : vector<8x128xf32>
    %cst_14 = arith.constant 0.000000e+00 : f32
    %25 = vector.broadcast %cst_14 : f32 to vector<8x128xf32>
    %26 = arith.maximumf %24, %25 : vector<8x128xf32>
    %27 = arith.truncf %26 : vector<8x128xf32> to vector<8x128xbf16>
    %c2 = arith.constant 2 : index
    %c0_15 = arith.constant 0 : index
    %c0_16 = arith.constant 0 : index
    %28 = vector.load %arg3[%c2, %c0_15, %c0_16] : memref<4x128x128xbf16, #tpu.memory_space<vmem>>, vector<1x128x128xbf16>
    %29 = vector.shape_cast %28 : vector<1x128x128xbf16> to vector<128x128xbf16>
    %cst_17 = arith.constant dense<0.000000e+00> : vector<8x128xf32>
    %30 = tpu.matmul %27, %29, %cst_17 {dimension_numbers = #tpu.dot_dimension_numbers<[1], [0], [0], [1], [0, 0, 1, 1], [], []>} : vector<8x128xbf16>, vector<128x128xbf16>, vector<8x128xf32> -> vector<8x128xf32>
    %31 = vector.extract_strided_slice %0 {offsets = [3, 0], sizes = [1, 128], strides = [1, 1]} : vector<5x128xf32> to vector<1x128xf32>
    %32 = vector.broadcast %31 : vector<1x128xf32> to vector<8x128xf32>
    %33 = arith.addf %30, %32 : vector<8x128xf32>
    %cst_18 = arith.constant 0.000000e+00 : f32
    %34 = vector.broadcast %cst_18 : f32 to vector<8x128xf32>
    %35 = arith.maximumf %33, %34 : vector<8x128xf32>
    %36 = arith.truncf %35 : vector<8x128xf32> to vector<8x128xbf16>
    %c3 = arith.constant 3 : index
    %c0_19 = arith.constant 0 : index
    %c0_20 = arith.constant 0 : index
    %37 = vector.load %arg3[%c3, %c0_19, %c0_20] : memref<4x128x128xbf16, #tpu.memory_space<vmem>>, vector<1x128x128xbf16>
    %38 = vector.shape_cast %37 : vector<1x128x128xbf16> to vector<128x128xbf16>
    %cst_21 = arith.constant dense<0.000000e+00> : vector<8x128xf32>
    %39 = tpu.matmul %36, %38, %cst_21 {dimension_numbers = #tpu.dot_dimension_numbers<[1], [0], [0], [1], [0, 0, 1, 1], [], []>} : vector<8x128xbf16>, vector<128x128xbf16>, vector<8x128xf32> -> vector<8x128xf32>
    %40 = vector.extract_strided_slice %0 {offsets = [4, 0], sizes = [1, 128], strides = [1, 1]} : vector<5x128xf32> to vector<1x128xf32>
    %41 = vector.broadcast %40 : vector<1x128xf32> to vector<8x128xf32>
    %42 = arith.addf %39, %41 : vector<8x128xf32>
    %cst_22 = arith.constant 0.000000e+00 : f32
    %43 = vector.broadcast %cst_22 : f32 to vector<8x128xf32>
    %44 = arith.maximumf %42, %43 : vector<8x128xf32>
    %45 = arith.truncf %44 : vector<8x128xf32> to vector<8x128xbf16>
    %c0_23 = arith.constant 0 : index
    %c0_24 = arith.constant 0 : index
    %46 = vector.load %arg4[%c0_23, %c0_24] : memref<128x128xbf16, #tpu.memory_space<vmem>>, vector<128x128xbf16>
    %cst_25 = arith.constant dense<0.000000e+00> : vector<8x128xf32>
    %47 = tpu.matmul %45, %46, %cst_25 {dimension_numbers = #tpu.dot_dimension_numbers<[1], [0], [0], [1], [0, 0, 1, 1], [], []>} : vector<8x128xbf16>, vector<128x128xbf16>, vector<8x128xf32> -> vector<8x128xf32>
    %c0_26 = arith.constant 0 : index
    %c0_27 = arith.constant 0 : index
    %48 = vector.load %arg6[%c0_26, %c0_27] : memref<1x128xf32, #tpu.memory_space<vmem>>, vector<1x128xf32>
    %49 = vector.broadcast %48 : vector<1x128xf32> to vector<8x128xf32>
    %50 = arith.addf %47, %49 : vector<8x128xf32>
    %c0_28 = arith.constant 0 : index
    %c0_29 = arith.constant 0 : index
    %51 = vector.load %arg7[%c0_28, %c0_29] : memref<8x128xf32, #tpu.memory_space<vmem>>, vector<8x128xf32>
    tpu.vector_store %arg7[%c0_28, %c0_29], %50 {strides = array<i32>} : memref<8x128xf32, #tpu.memory_space<vmem>>, vector<8x128xf32>,
    return
  }
  func.func @transform_0(%arg0: i32) -> (i32, i32) {
    %c0_i32 = arith.constant 0 : i32
    %c0_i32_0 = arith.constant 0 : i32
    return %arg0, %c0_i32 : i32, i32
  }
  func.func @transform_1(%arg0: i32) -> (i32, i32) {
    %c0_i32 = arith.constant 0 : i32
    %c0_i32_0 = arith.constant 0 : i32
    %c0_i32_1 = arith.constant 0 : i32
    return %c0_i32, %c0_i32_0 : i32, i32
  }
  func.func @transform_2(%arg0: i32) -> (i32, i32, i32) {
    %c0_i32 = arith.constant 0 : i32
    %c0_i32_0 = arith.constant 0 : i32
    %c0_i32_1 = arith.constant 0 : i32
    %c0_i32_2 = arith.constant 0 : i32
    return %c0_i32, %c0_i32_0, %c0_i32_1 : i32, i32, i32
  }
  func.func @transform_3(%arg0: i32) -> (i32, i32) {
    %c0_i32 = arith.constant 0 : i32
    %c0_i32_0 = arith.constant 0 : i32
    %c0_i32_1 = arith.constant 0 : i32
    return %c0_i32, %c0_i32_0 : i32, i32
  }
  func.func @transform_4(%arg0: i32) -> (i32, i32) {
    %c0_i32 = arith.constant 0 : i32
    %c0_i32_0 = arith.constant 0 : i32
    %c0_i32_1 = arith.constant 0 : i32
    return %c0_i32, %c0_i32_0 : i32, i32
  }
  func.func @transform_5(%arg0: i32) -> (i32, i32) {
    %c0_i32 = arith.constant 0 : i32
    %c0_i32_0 = arith.constant 0 : i32
    %c0_i32_1 = arith.constant 0 : i32
    return %c0_i32, %c0_i32_0 : i32, i32
  }
  func.func @transform_6(%arg0: i32) -> (i32, i32) {
    %c0_i32 = arith.constant 0 : i32
    %c0_i32_0 = arith.constant 0 : i32
    return %arg0, %c0_i32 : i32, i32
  }
}

</mosaic_0001>

<bundles_post_ra>
// kernel: noise_predictor_initial_forward.1
= control target key start
LH: loop header
LB: loop body
LE: loop exit
PB: predicated region body
PF: predicated region fallthrough
CT: control target
= control target key end

     0   :  { %11 = vsyncpa [#allocation3], 0  ;;  %s1217_s0 = inlined_call_operand.vmem [shape: bf16[8,128], index: 0, kind: input, shape index: {}]   ;;  %s1218_s1 = inlined_call_operand.hbm [shape: bf16[128,128], index: 1, kind: input, shape index: {}]   ;;  %s1219_s2 = inlined_call_operand.hbm [shape: bf16[4,128,128], index: 2, kind: input, shape index: {}]   ;;  %s1220_s3 = inlined_call_operand.hbm [shape: bf16[128,128], index: 3, kind: input, shape index: {}]   ;;  %s1221_s4 = inlined_call_operand.vmem [shape: f32[5,128], index: 4, kind: input, shape index: {}]   ;;  %s1222_s5 = inlined_call_operand.vmem [shape: f32[1,128], index: 5, kind: input, shape index: {}]   ;;  %s1223_s6 = inlined_call_operand.vmem [shape: f32[8,128], index: 6, kind: output, shape index: {}]  }
   0x1   :  { %12 = vsyncpa [#allocation5], 0  ;;  %s1080_s21 = smov [#allocation4]   ;;  %s1081_s23 = smov [#allocation2]  }
   0x2   :  { %s32_s22 = sshll.u32 %s1080_s21, 4  ;;  %s20_s24 = sshll.u32 %s1081_s23, 4  ;;  %s33_s22 = int_to_ptr.vmem [resolvable:$true] %s32_s22  ;;  %s21_s24 = int_to_ptr.vmem [resolvable:$true] %s20_s24 }
   0x3   :  { %s1024_s25 = scalar_lea.vmem %s33_s22, 4096  ;;  %p1029_p1 = scmp.lt.s32.totalorder %s33_s22, %s33_s22 }
   0x4   :  { %p1025_p0 = scmp.ne.s32.totalorder %s33_s22, %s1024_s25  ;;  %p1030_p2 = scmp.lt.s32.totalorder %s1024_s25, %s1024_s25 }
   0x6   :  { %p1031_p3 = por %p1030_p2, %p1029_p1 }
   0x8   :  { %p1032_p4 = pnand %p1031_p3, %p1025_p0 }
   0xa   :  { %1035 = shalt.err (!%p1032_p4)
}
   0xb   :  { %s1082_s26 = smov 64   ;;  %s1083_s27 = smov 4  }
   0xc   :  { %38 = dma.hbm_to_vmem [thread:$0]  %s1219_s2, 4096, %s33_s22, [#allocation5], %s1082_s26, %s1082_s26, %s1083_s27  }
   0xd   :  { %s1044_s30 = scalar_lea.vmem %s21_s24, 1024  ;;  %p1049_p6 = scmp.lt.s32.totalorder %s21_s24, %s21_s24 }
   0xe   :  { %p1045_p5 = scmp.ne.s32.totalorder %s21_s24, %s1044_s30  ;;  %p1050_p7 = scmp.lt.s32.totalorder %s1044_s30, %s1044_s30 }
  0x10   :  { %p1051_p8 = por %p1050_p7, %p1049_p6 }
  0x12   :  { %p1052_p9 = pnand %p1051_p8, %p1045_p5 }
  0x14   :  { %1055 = shalt.err (!%p1052_p9)
}
  0x15   :  { %26 = dma.hbm_to_vmem [thread:$0]  %s1218_s1, 1024, %s21_s24, [#allocation3], %s1082_s26, %s1082_s26, %s1083_s27  }
  0x16   :  { %s1084_s9 = smov [#allocation6]  }
  0x17   :  { %s44_s10 = sshll.u32 %s1084_s9, 4  ;;  %s45_s10 = int_to_ptr.vmem [resolvable:$true] %s44_s10 }
  0x18   :  { %s1064_s11 = scalar_lea.vmem %s45_s10, 1024  ;;  %p1069_p11 = scmp.lt.s32.totalorder %s45_s10, %s45_s10 }
  0x19   :  { %p1065_p10 = scmp.ne.s32.totalorder %s45_s10, %s1064_s11  ;;  %p1070_p12 = scmp.lt.s32.totalorder %s1064_s11, %s1064_s11 }
  0x1b   :  { %p1071_p13 = por %p1070_p12, %p1069_p11 }
  0x1d   :  { %p1072_p0 = pnand %p1071_p13, %p1065_p10 }
  0x1f   :  { %1075 = shalt.err (!%p1072_p0)
}
  0x20   :  { %50 = dma.hbm_to_vmem [thread:$0]  %s1220_s3, 1024, %s45_s10, [#allocation5], %s1082_s26, %s1082_s26, %s1083_s27  }
  0x21   :  { %1076 = dma.done.wait [#allocation3], 1024  }
  0x22   :  { %1077 = vsyncadd [#allocation3], 4294966272 }
  0x23   :  { %1078 = dma.done.wait [#allocation5], 5120  }
  0x24   :  { %1079 = vsyncadd [#allocation5], 4294962176  ;;  %v1085_v0 = vmov 0.0   ;;  %vm1086_vm0 = vmmov 0   ;;  %v968_v1 = vld [vmem:[#allocation2 + $0x38] sm:$0xff]   ;;  %v969_v2 = vld [vmem:[#allocation2 + $0x30] sm:$0xff]   ;;  %v83_v24 = vlaneseq }
  0x25   :  { %841 = vmatprep.subr.bf16.mxu0 %v1085_v0  ;;  %857 = vmatprep.mubr.msk.bf16.mxu0 %vm1086_vm0, %v1085_v0  ;;  %v970_v3 = vld [vmem:[#allocation2 + $0x28] sm:$0xff]   ;;  %v976_v4 = vld [vmem:[#allocation4 + $0x38] sm:$0xff]   ;;  %v971_v5 = vld [vmem:[#allocation2 + $0x20] sm:$0xff]  }
  0x26   :  { %861 = vmatprep.subr.bf16.mxu1 %v1085_v0  ;;  %877 = vmatprep.mubr.msk.bf16.mxu1 %vm1086_vm0, %v1085_v0  ;;  %v977_v6 = vld [vmem:[#allocation4 + $0x30] sm:$0xff]   ;;  %v972_v7 = vld [vmem:[#allocation2 + $0x18] sm:$0xff]   ;;  %v978_v8 = vld [vmem:[#allocation4 + $0x28] sm:$0xff]   ;;  %v1164_v25 = vshrl.u32 %v83_v24, 7 }
  0x27   :  { %842 = vmatpush3.bf16.msra.mxu0 %v968_v1  ;;  %862 = vmatpush3.bf16.msra.mxu1 %v976_v4  ;;  %v973_v9 = vld [vmem:[#allocation2 + $0x10] sm:$0xff]   ;;  %v979_v10 = vld [vmem:[#allocation4 + $0x20] sm:$0xff]   ;;  %v974_v11 = vld [vmem:[#allocation2 + $0x8] sm:$0xff]  }
  0x28   :  { %843 = vmatprep.subr.bf16.mxu0 %v1085_v0  ;;  %863 = vmatprep.subr.bf16.mxu1 %v1085_v0  ;;  %v980_v12 = vld [vmem:[#allocation4 + $0x18] sm:$0xff]   ;;  %v975_v13 = vld [vmem:[#allocation2] sm:$0xff]   ;;  %v981_v14 = vld [vmem:[#allocation4 + $0x10] sm:$0xff]   ;;  %v85_v26 = vsub.s32 0, %v1164_v25  ;;  %v195_v44 = vsub.s32 1, %v1164_v25  ;;  %v306_v61 = vsub.s32 2, %v1164_v25 }
  0x29   :  { %v66_v15 = vld [vmem:[%s1217_s0] sm:$0xf]  ;;  %v982_v16 = vld [vmem:[#allocation4 + $0x8] sm:$0xff]   ;;  %v984_v18 = vld [vmem:[#allocation4 + $0x78] sm:$0xff]  }
  0x2a   :  { %v983_v17 = vld [vmem:[#allocation4] sm:$0xff]   ;;  %v985_v19 = vld [vmem:[#allocation4 + $0x70] sm:$0xff]   ;;  %v986_v20 = vld [vmem:[#allocation4 + $0x68] sm:$0xff]  }
  0x2b   :  { %844 = vmatpush3.bf16.msra.mxu0 %v969_v2  ;;  %864 = vmatpush3.bf16.msra.mxu1 %v977_v6  ;;  %v987_v21 = vld [vmem:[#allocation4 + $0x60] sm:$0xff]   ;;  %v988_v22 = vld [vmem:[#allocation4 + $0x58] sm:$0xff]   ;;  %v989_v23 = vld [vmem:[#allocation4 + $0x50] sm:$0xff]  }
  0x2c   :  { %845 = vmatprep.subr.bf16.mxu0 %v1085_v0  ;;  %865 = vmatprep.subr.bf16.mxu1 %v1085_v0  ;;  %v1170_v27 = vld [vmem:[%s1221_s4] sm:$0x1f]  ;;  %v990_v36 = vld [vmem:[#allocation4 + $0x48] sm:$0xff]   ;;  %v992_v38 = vld [vmem:[#allocation4 + $0xb8] sm:$0xff]  }
  0x2d   :  { %v86_v28 = vrot.slane %v1170_v27, %v85_v26  ;;  %v991_v37 = vld [vmem:[#allocation4 + $0x40] sm:$0xff]   ;;  %v993_v39 = vld [vmem:[#allocation4 + $0xb0] sm:$0xff]   ;;  %v994_v40 = vld [vmem:[#allocation4 + $0xa8] sm:$0xff]   ;;  %v196_v45 = vrot.slane %v1170_v27, %v195_v44  ;;  %v307_v62 = vrot.slane %v1170_v27, %v306_v61 }
  0x2e   :  { %v995_v41 = vld [vmem:[#allocation4 + $0xa0] sm:$0xff]   ;;  %v996_v42 = vld [vmem:[#allocation4 + $0x98] sm:$0xff]   ;;  %v997_v43 = vld [vmem:[#allocation4 + $0x90] sm:$0xff]  }
  0x2f   :  { %846 = vmatpush3.bf16.msra.mxu0 %v970_v3  ;;  %866 = vmatpush3.bf16.msra.mxu1 %v978_v8  ;;  %v998_v53 = vld [vmem:[#allocation4 + $0x88] sm:$0xff]   ;;  %v999_v54 = vld [vmem:[#allocation4 + $0x80] sm:$0xff]   ;;  %v1000_v55 = vld [vmem:[#allocation4 + $0xf8] sm:$0xff]  }
  0x30   :  { %847 = vmatprep.subr.bf16.mxu0 %v1085_v0  ;;  %867 = vmatprep.subr.bf16.mxu1 %v1085_v0  ;;  %v1001_v56 = vld [vmem:[#allocation4 + $0xf0] sm:$0xff]   ;;  %v1002_v57 = vld [vmem:[#allocation4 + $0xe8] sm:$0xff]   ;;  %v1003_v58 = vld [vmem:[#allocation4 + $0xe0] sm:$0xff]  }
  0x31   :  { %v1004_v59 = vld [vmem:[#allocation4 + $0xd8] sm:$0xff]   ;;  %v1005_v60 = vld [vmem:[#allocation4 + $0xd0] sm:$0xff]   ;;  %v1007_v8 = vld [vmem:[#allocation4 + $0xc0] sm:$0xff]  }
  0x32   :  { %v1014_v24 = vld [vmem:[#allocation6 + $0x8] sm:$0xff]   ;;  %v1015_v26 = vld [vmem:[#allocation6] sm:$0xff]  }
  0x33   :  { %848 = vmatpush3.bf16.msra.mxu0 %v971_v5  ;;  %868 = vmatpush3.bf16.msra.mxu1 %v979_v10  ;;  %v1009_v10 = vld [vmem:[#allocation6 + $0x30] sm:$0xff]  }
  0x34   :  { %849 = vmatprep.subr.bf16.mxu0 %v1085_v0  ;;  %869 = vmatprep.subr.bf16.mxu1 %v1085_v0 }
  0x37   :  { %850 = vmatpush3.bf16.msra.mxu0 %v972_v7  ;;  %870 = vmatpush3.bf16.msra.mxu1 %v980_v12  ;;  %v1006_v7 = vld [vmem:[#allocation4 + $0xc8] sm:$0xff]   ;;  %v1011_v12 = vld [vmem:[#allocation6 + $0x20] sm:$0xff]  }
  0x38   :  { %851 = vmatprep.subr.bf16.mxu0 %v1085_v0  ;;  %871 = vmatprep.subr.bf16.mxu1 %v1085_v0 }
  0x3b   :  { %852 = vmatpush3.bf16.msra.mxu0 %v973_v9  ;;  %872 = vmatpush3.bf16.msra.mxu1 %v981_v14  ;;  %v1008_v9 = vld [vmem:[#allocation6 + $0x38] sm:$0xff]   ;;  %v1013_v14 = vld [vmem:[#allocation6 + $0x10] sm:$0xff]  }
  0x3c   :  { %853 = vmatprep.subr.bf16.mxu0 %v1085_v0  ;;  %873 = vmatprep.subr.bf16.mxu1 %v1085_v0 }
  0x3f   :  { %854 = vmatpush3.bf16.msra.mxu0 %v974_v11  ;;  %874 = vmatpush3.bf16.msra.mxu1 %v982_v16  ;;  %v1010_v11 = vld [vmem:[#allocation6 + $0x28] sm:$0xff]  }
  0x40   :  { %855 = vmatprep.subr.bf16.mxu0 %v1085_v0  ;;  %875 = vmatprep.subr.bf16.mxu1 %v1085_v0 }
  0x43   :  { %856 = vmatpush3.bf16.msra.mxu0 %v975_v13  ;;  %876 = vmatpush3.bf16.msra.mxu1 %v983_v17  ;;  %v1012_v13 = vld [vmem:[#allocation6 + $0x18] sm:$0xff]  }
  0x44   :  { %881 = vmatprep.subr.bf16.mxu0 %v1085_v0  ;;  %901 = vmatprep.subr.bf16.mxu1 %v1085_v0 }
  0x46   :  { %858 = vmatmul.mubr.bf16.vlgmr.msra.gmra.mxu0 %v66_v15  ;;  %v417_v15 = vsub.s32 3, %v1164_v25 }
  0x47   :  { %897 = vmatprep.mubr.msk.bf16.mxu0 %vm1086_vm0, %v1085_v0  ;;  %882 = vmatpush3.bf16.msra.mxu0 %v984_v18 }
  0x48   :  { %883 = vmatprep.subr.bf16.mxu0 %v1085_v0  ;;  %v418_v16 = vrot.slane %v1170_v27, %v417_v15 }
  0x4b   :  { %884 = vmatpush3.bf16.msra.mxu0 %v985_v19 }
  0x4c   :  { %885 = vmatprep.subr.bf16.mxu0 %v1085_v0 }
  0x4f   :  { %886 = vmatpush3.bf16.msra.mxu0 %v986_v20 }
  0x50   :  { %887 = vmatprep.subr.bf16.mxu0 %v1085_v0 }
  0x53   :  { %888 = vmatpush3.bf16.msra.mxu0 %v987_v21 }
  0x54   :  { %889 = vmatprep.subr.bf16.mxu0 %v1085_v0 }
  0x57   :  { %890 = vmatpush3.bf16.msra.mxu0 %v988_v22 }
  0x58   :  { %891 = vmatprep.subr.bf16.mxu0 %v1085_v0 }
  0x5b   :  { %892 = vmatpush3.bf16.msra.mxu0 %v989_v23 }
  0x5c   :  { %893 = vmatprep.subr.bf16.mxu0 %v1085_v0 }
  0x5f   :  { %894 = vmatpush3.bf16.msra.mxu0 %v990_v36 }
  0x60   :  { %895 = vmatprep.subr.bf16.mxu0 %v1085_v0 }
  0x63   :  { %896 = vmatpush3.bf16.msra.mxu0 %v991_v37  ;;  %v778_v37 = vld [vmem:[%s1222_s5] ss:$0 sm:$0xff] }
  0x64   :  { %921 = vmatprep.subr.bf16.mxu0 %v1085_v0 }
 0x106   :  { %v169_v29 = vpop.f32.mrf.mxu0 }
 0x107   :  { %v170_v30 = vadd.f32 %v169_v29, %v86_v28  ;;  %v528_v28 = vsub.s32 4, %v1164_v25 }
 0x108   :  { %v859_v31 = vpop.f32.mrf.mxu0 }
 0x109   :  { %v175_v32 = vmax.f32 %v170_v30, 0.0  ;;  %v529_v29 = vrot.slane %v1170_v27, %v528_v28 }
 0x10a   :  { %v172_v33 = vpop.f32.mrf.mxu0 }
 0x10b   :  { %v176_v34 = vpack.c.bf16 %v175_v32, %v175_v32 }
 0x10c   :  { %v860_v35 = vpop.f32.mrf.mxu0 }
 0x10d   :  { %878 = vmatmul.mubr.bf16.vlgmr.msra.gmra.mxu1 %v176_v34 }
 0x10e   :  { %917 = vmatprep.mubr.msk.bf16.mxu1 %vm1086_vm0, %v1085_v0  ;;  %902 = vmatpush3.bf16.msra.mxu1 %v992_v38 }
 0x10f   :  { %903 = vmatprep.subr.bf16.mxu1 %v1085_v0 }
 0x112   :  { %904 = vmatpush3.bf16.msra.mxu1 %v993_v39 }
 0x113   :  { %905 = vmatprep.subr.bf16.mxu1 %v1085_v0 }
 0x116   :  { %906 = vmatpush3.bf16.msra.mxu1 %v994_v40 }
 0x117   :  { %907 = vmatprep.subr.bf16.mxu1 %v1085_v0 }
 0x11a   :  { %908 = vmatpush3.bf16.msra.mxu1 %v995_v41 }
 0x11b   :  { %909 = vmatprep.subr.bf16.mxu1 %v1085_v0 }
 0x11e   :  { %910 = vmatpush3.bf16.msra.mxu1 %v996_v42 }
 0x11f   :  { %911 = vmatprep.subr.bf16.mxu1 %v1085_v0 }
 0x122   :  { %912 = vmatpush3.bf16.msra.mxu1 %v997_v43 }
 0x123   :  { %913 = vmatprep.subr.bf16.mxu1 %v1085_v0 }
 0x126   :  { %914 = vmatpush3.bf16.msra.mxu1 %v998_v53 }
 0x127   :  { %915 = vmatprep.subr.bf16.mxu1 %v1085_v0 }
 0x12a   :  { %916 = vmatpush3.bf16.msra.mxu1 %v999_v54 }
 0x12b   :  { %941 = vmatprep.subr.bf16.mxu1 %v1085_v0 }
 0x1cd   :  { %v279_v46 = vpop.f32.mrf.mxu1 }
 0x1ce   :  { %v280_v47 = vadd.f32 %v279_v46, %v196_v45 }
 0x1cf   :  { %v879_v48 = vpop.f32.mrf.mxu1 }
 0x1d0   :  { %v285_v49 = vmax.f32 %v280_v47, 0.0 }
 0x1d1   :  { %v282_v50 = vpop.f32.mrf.mxu1 }
 0x1d2   :  { %v286_v51 = vpack.c.bf16 %v285_v49, %v285_v49 }
 0x1d3   :  { %v880_v52 = vpop.f32.mrf.mxu1 }
 0x1d4   :  { %898 = vmatmul.mubr.bf16.vlgmr.msra.gmra.mxu0 %v286_v51 }
 0x1d5   :  { %937 = vmatprep.mubr.msk.bf16.mxu0 %vm1086_vm0, %v1085_v0  ;;  %922 = vmatpush3.bf16.msra.mxu0 %v1000_v55 }
 0x1d6   :  { %923 = vmatprep.subr.bf16.mxu0 %v1085_v0 }
 0x1d9   :  { %924 = vmatpush3.bf16.msra.mxu0 %v1001_v56 }
 0x1da   :  { %925 = vmatprep.subr.bf16.mxu0 %v1085_v0 }
 0x1dd   :  { %926 = vmatpush3.bf16.msra.mxu0 %v1002_v57 }
 0x1de   :  { %927 = vmatprep.subr.bf16.mxu0 %v1085_v0 }
 0x1e1   :  { %928 = vmatpush3.bf16.msra.mxu0 %v1003_v58 }
 0x1e2   :  { %929 = vmatprep.subr.bf16.mxu0 %v1085_v0 }
 0x1e5   :  { %930 = vmatpush3.bf16.msra.mxu0 %v1004_v59 }
 0x1e6   :  { %931 = vmatprep.subr.bf16.mxu0 %v1085_v0 }
 0x1e9   :  { %932 = vmatpush3.bf16.msra.mxu0 %v1005_v60 }
 0x1ea   :  { %933 = vmatprep.subr.bf16.mxu0 %v1085_v0 }
 0x1ed   :  { %934 = vmatpush3.bf16.msra.mxu0 %v1006_v7 }
 0x1ee   :  { %935 = vmatprep.subr.bf16.mxu0 %v1085_v0 }
 0x1f1   :  { %936 = vmatpush3.bf16.msra.mxu0 %v1007_v8 }
 0x294   :  { %v390_v63 = vpop.f32.mrf.mxu0 }
 0x295   :  { %v391_v1 = vadd.f32 %v390_v63, %v307_v62 }
 0x296   :  { %v899_v2 = vpop.f32.mrf.mxu0 }
 0x297   :  { %v396_v3 = vmax.f32 %v391_v1, 0.0 }
 0x298   :  { %v393_v4 = vpop.f32.mrf.mxu0 }
 0x299   :  { %v397_v5 = vpack.c.bf16 %v396_v3, %v396_v3 }
 0x29a   :  { %v900_v6 = vpop.f32.mrf.mxu0 }
 0x29b   :  { %918 = vmatmul.mubr.bf16.vlgmr.msra.gmra.mxu1 %v397_v5 }
 0x29c   :  { %957 = vmatprep.mubr.msk.bf16.mxu1 %vm1086_vm0, %v1085_v0  ;;  %942 = vmatpush3.bf16.msra.mxu1 %v1008_v9 }
 0x29d   :  { %943 = vmatprep.subr.bf16.mxu1 %v1085_v0 }
 0x2a0   :  { %944 = vmatpush3.bf16.msra.mxu1 %v1009_v10 }
 0x2a1   :  { %945 = vmatprep.subr.bf16.mxu1 %v1085_v0 }
 0x2a4   :  { %946 = vmatpush3.bf16.msra.mxu1 %v1010_v11 }
 0x2a5   :  { %947 = vmatprep.subr.bf16.mxu1 %v1085_v0 }
 0x2a8   :  { %948 = vmatpush3.bf16.msra.mxu1 %v1011_v12 }
 0x2a9   :  { %949 = vmatprep.subr.bf16.mxu1 %v1085_v0 }
 0x2ac   :  { %950 = vmatpush3.bf16.msra.mxu1 %v1012_v13 }
 0x2ad   :  { %951 = vmatprep.subr.bf16.mxu1 %v1085_v0 }
 0x2b0   :  { %952 = vmatpush3.bf16.msra.mxu1 %v1013_v14 }
 0x2b1   :  { %953 = vmatprep.subr.bf16.mxu1 %v1085_v0 }
 0x2b4   :  { %954 = vmatpush3.bf16.msra.mxu1 %v1014_v24 }
 0x2b5   :  { %955 = vmatprep.subr.bf16.mxu1 %v1085_v0 }
 0x2b8   :  { %956 = vmatpush3.bf16.msra.mxu1 %v1015_v26 }
 0x35b   :  { %v501_v17 = vpop.f32.mrf.mxu1 }
 0x35c   :  { %v502_v18 = vadd.f32 %v501_v17, %v418_v16 }
 0x35d   :  { %v919_v19 = vpop.f32.mrf.mxu1 }
 0x35e   :  { %v507_v20 = vmax.f32 %v502_v18, 0.0 }
 0x35f   :  { %v504_v21 = vpop.f32.mrf.mxu1 }
 0x360   :  { %v508_v22 = vpack.c.bf16 %v507_v20, %v507_v20 }
 0x361   :  { %v920_v23 = vpop.f32.mrf.mxu1 }
 0x362   :  { %938 = vmatmul.mubr.bf16.vlgmr.msra.gmra.mxu0 %v508_v22 }
 0x422   :  { %v612_v30 = vpop.f32.mrf.mxu0 }
 0x423   :  { %v613_v31 = vadd.f32 %v612_v30, %v529_v29 }
 0x424   :  { %v939_v32 = vpop.f32.mrf.mxu0 }
 0x425   :  { %v618_v33 = vmax.f32 %v613_v31, 0.0 }
 0x426   :  { %v615_v34 = vpop.f32.mrf.mxu0 }
 0x427   :  { %v619_v35 = vpack.c.bf16 %v618_v33, %v618_v33 }
 0x428   :  { %v940_v36 = vpop.f32.mrf.mxu0 }
 0x429   :  { %958 = vmatmul.mubr.bf16.vlgmr.msra.gmra.mxu1 %v619_v35 }
 0x4e9   :  { %v725_v38 = vpop.f32.mrf.mxu1 }
 0x4ea   :  { %v726_v0 = vadd.f32 %v778_v37, %v725_v38 }
 0x4eb   :  { %v959_v39 = vpop.f32.mrf.mxu1 }
 0x4ec   :  { %731 = vst [vmem:[%s1223_s6] sm:$0xff] %v726_v0 }
 0x4ed   :  { %v728_v25 = vpop.f32.mrf.mxu1 }
 0x4ef   :  { %v960_v27 = vpop.f32.mrf.mxu1 }
 0x4f0   :  { %736 = vsyncpa [#allocation3], 1 }
 0x4f1   :  { %737 = vsyncpa [#allocation5], 1 }

</bundles_post_ra>
